<compile_context>
chip_gen: v7x
topology: tpu7x:2x2x1
jax: 0.10.0
libtpu: 0.0.40
codegen_flags: <defaults>
</compile_context>

<pallas_src>
import functools

import jax
import jax.numpy as jnp
from jax import lax
from jax.experimental import pallas as pl
from jax.experimental.pallas import tpu as pltpu

_MIB = 1024 * 1024


# ---------------------------------------------------------------------------
# Kernel bodies
# ---------------------------------------------------------------------------
def _w_position(flat, W):
    """Column index w = flat % W without relying on vector integer division."""
    if W & (W - 1) == 0:                                  # power-of-two width
        return jnp.bitwise_and(flat, W - 1)
    q = jnp.floor(flat.astype(jnp.float32) * (1.0 / W)).astype(jnp.int32)
    r = flat - q * W
    r = jnp.where(r < 0, r + W, r)        # off-by-one guards for the f32 floor
    r = jnp.where(r >= W, r - W, r)
    return r


def _edge_masks(flat, W, L):
    """Masks reproducing conv2d's zero padding at the image borders."""
    w_pos = _w_position(flat, W)
    has_right = w_pos < (W - 1)           # column w+1 exists
    has_left = w_pos > 0                  # column w-1 exists
    has_down = flat < (L - W)             # row h+1 exists
    has_up = flat >= W                    # row h-1 exists
    return has_right, has_left, has_down, has_up


def _d2n_folded_kernel(x_ref, o_ref, *, H, W):
    """Block (bt, 3*L): channels are 128-aligned lane slices of length L."""
    L = H * W
    x = x_ref[...]

    flat = lax.broadcasted_iota(jnp.int32, (1, L), 1)
    has_right, has_left, has_down, has_up = _edge_masks(flat, W, L)
    zero = jnp.zeros((), x.dtype)

    def dzdx(c):                                    # x[h, w+1] - x[h, w-1]
        nxt = pltpu.roll(c, (L - 1) % L, 1)         # c[i] <- c[i + 1]
        prv = pltpu.roll(c, 1 % L, 1)               # c[i] <- c[i - 1]
        return jnp.where(has_right, nxt, zero) - jnp.where(has_left, prv, zero)

    def dzdy(c):                                    # x[h+1, w] - x[h-1, w]
        dwn = pltpu.roll(c, (L - W) % L, 1)         # c[i] <- c[i + W]
        up = pltpu.roll(c, W % L, 1)                # c[i] <- c[i - W]
        return jnp.where(has_down, dwn, zero) - jnp.where(has_up, up, zero)

    c0, c1, c2 = x[:, :L], x[:, L:2 * L], x[:, 2 * L:]
    a0, b0 = dzdx(c0), dzdy(c0)
    a1, b1 = dzdx(c1), dzdy(c1)
    a2, b2 = dzdx(c2), dzdy(c2)

    # normal = -cross(dzdx, dzdy) = cross(dzdy, dzdx); lane-dense per-channel stores.
    o_ref[:, :L] = b1 * a2 - b2 * a1
    o_ref[:, L:2 * L] = b2 * a0 - b0 * a2
    o_ref[:, 2 * L:] = b0 * a1 - b1 * a0


def _d2n_sublane_kernel(x_ref, o_ref, *, H, W):
    """Block (bt, 3, L): channel dim on sublanes (fallback when L % 128 != 0)."""
    L = H * W
    x = x_ref[...]

    flat = lax.broadcasted_iota(jnp.int32, (1, 1, L), 2)
    has_right, has_left, has_down, has_up = _edge_masks(flat, W, L)
    zero = jnp.zeros((), x.dtype)

    dzdx = (jnp.where(has_right, jnp.roll(x, -1, axis=2), zero)
            - jnp.where(has_left, jnp.roll(x, 1, axis=2), zero))
    a0, a1, a2 = dzdx[:, 0:1, :], dzdx[:, 1:2, :], dzdx[:, 2:3, :]

    dzdy = (jnp.where(has_down, jnp.roll(x, -W, axis=2), zero)
            - jnp.where(has_up, jnp.roll(x, W, axis=2), zero))
    b0, b1, b2 = dzdy[:, 0:1, :], dzdy[:, 1:2, :], dzdy[:, 2:3, :]

    o_ref[:, 0:1, :] = b1 * a2 - b2 * a1
    o_ref[:, 1:2, :] = b2 * a0 - b0 * a2
    o_ref[:, 2:3, :] = b0 * a1 - b1 * a0


def _d2n_rowtile_kernel(x_ref, o_ref, *, W, L, tile, halo):
    """x_ref: (1, 3, tile + 2*halo) overlapping window of the zero-padded flat
    depth (left pad = halo zeros); o_ref: (1, 3, tile)."""
    blk = x_ref[...]
    base = pl.program_id(1) * tile                      # absolute flat offset
    flat = base + lax.broadcasted_iota(jnp.int32, (1, 1, tile), 2)
    has_right, has_left, has_down, has_up = _edge_masks(flat, W, L)
    zero = jnp.zeros((), blk.dtype)

    def shifted(s):               # value at absolute flat index (flat + s)
        return blk[:, :, halo + s: halo + s + tile]     # halo >= W keeps it in-block

    dzdx = (jnp.where(has_right, shifted(1), zero)
            - jnp.where(has_left, shifted(-1), zero))
    a0, a1, a2 = dzdx[:, 0:1, :], dzdx[:, 1:2, :], dzdx[:, 2:3, :]

    dzdy = (jnp.where(has_down, shifted(W), zero)
            - jnp.where(has_up, shifted(-W), zero))
    b0, b1, b2 = dzdy[:, 0:1, :], dzdy[:, 1:2, :], dzdy[:, 2:3, :]

    o_ref[:, 0:1, :] = b1 * a2 - b2 * a1
    o_ref[:, 1:2, :] = b2 * a0 - b0 * a2
    o_ref[:, 2:3, :] = b0 * a1 - b1 * a0


# ---------------------------------------------------------------------------
# Wrapper / tiling heuristics
# ---------------------------------------------------------------------------
def _tpu_generation_info():
    """(physical VMEM bytes per TensorCore, #TensorCores sharing the grid)."""
    try:
        vmem = int(pltpu.get_tpu_info().vmem_capacity_bytes)
    except Exception:                       # be conservative: assume v7x
        vmem = 64 * _MIB
    num_tc = 2 if vmem <= 80 * _MIB else 1  # v7x: 64 MiB / 2 TCs; v5e/v6e: 128 MiB / 1 TC
    return vmem, num_tc


def _pick_batch_tile(B, per_image_bytes, budget_bytes, num_tc, need_mult8):
    """Largest batch block within the VMEM budget; prefers an even grid with
    >= 2 steps per TensorCore on megacore parts.  None if nothing legal fits."""
    if need_mult8:   # folded layout: sublane dim must be a multiple of 8 or == B
        cands = [d for d in range(1, B + 1) if B % d == 0 and (d % 8 == 0 or d == B)]
    else:
        cands = [d for d in range(1, B + 1) if B % d == 0]
    fitting = [d for d in cands if d * per_image_bytes <= budget_bytes]
    if not fitting:
        return None
    if num_tc >= 2:
        for d in sorted(fitting, reverse=True):
            steps = B // d
            if (steps >= 2 * num_tc and steps % num_tc == 0
                    and d * per_image_bytes >= _MIB):
                return d
    return max(fitting)


def depth2normal(x, *, force_row_tile=False, row_tile_elems=None):
    """normal = -cross(dzdx(x), dzdy(x), dim=1) for x of shape (B, 3, H, W)."""
    B, C, H, W = x.shape
    assert C == 3, "torch.cross(dim=1) requires 3 channels"
    L = H * W
    itemsize = x.dtype.itemsize

    phys_vmem, num_tc = _tpu_generation_info()
    vmem_cap = 3 * phys_vmem // 4                              # <= 75% of physical
    budget = 22 * _MIB if phys_vmem <= 80 * _MIB else 52 * _MIB
    cost = pl.CostEstimate(flops=15 * B * L, transcendentals=0,
                           bytes_accessed=2 * B * C * L * itemsize)

    # Whole-image working set per image per grid step: double-buffered input
    # and output blocks plus live in-kernel temporaries.
    per_image_bytes = 8 * C * L * itemsize

    if not force_row_tile and per_image_bytes <= budget:
        folded = (L % 128 == 0)
        bt = (_pick_batch_tile(B, per_image_bytes, budget, num_tc, need_mult8=True)
              if folded else None)
        if bt is not None:
            xf = x.reshape(B, C * L)
            kernel = functools.partial(_d2n_folded_kernel, H=H, W=W)
            block = (bt, C * L)
            index_map = lambda b: (b, 0)
        else:
            bt = _pick_batch_tile(B, per_image_bytes, budget, num_tc, need_mult8=False)
            xf = x.reshape(B, C, L)
            kernel = functools.partial(_d2n_sublane_kernel, H=H, W=W)
            block = (bt, C, L)
            index_map = lambda b: (b, 0, 0)

        vmem_limit = int(min(vmem_cap,
                             max(32 * _MIB, bt * per_image_bytes + 4 * _MIB)))
        out = pl.pallas_call(
            kernel,
            out_shape=jax.ShapeDtypeStruct(xf.shape, x.dtype),
            grid_spec=pltpu.PrefetchScalarGridSpec(
                num_scalar_prefetch=0,
                grid=(B // bt,),
                in_specs=[pl.BlockSpec(block, index_map)],
                out_specs=pl.BlockSpec(block, index_map),
            ),
            compiler_params=pltpu.CompilerParams(
                dimension_semantics=("parallel",),
                vmem_limit_bytes=vmem_limit,
            ),
            cost_estimate=cost,
        )(xf)
        return out.reshape(B, C, H, W)

    # ---- Row-tiled path: tile the flat H*W axis with a one-row halo --------
    # TODO(synk): the wrapper-side jnp.pad costs one extra HBM round trip of
    # the input; a pl.ANY + make_async_copy variant with clamped offsets
    # would remove it.
    halo = max(128, pl.cdiv(W, 128) * 128)            # >= one image row, lane aligned
    if row_tile_elems is not None:
        tile = max(128, (int(row_tile_elems) // 128) * 128)
    else:
        # ~16x per element: double-buffered in (with halo) + out blocks plus
        # in-kernel temporaries.
        tile = max(512, (budget // (16 * C * itemsize) // 128) * 128)
    tile = min(tile, pl.cdiv(L, 128) * 128)
    n_tiles = pl.cdiv(L, tile)
    Lp = n_tiles * tile
    blk = tile + 2 * halo

    xf = x.reshape(B, C, L)
    xp = jnp.pad(xf, ((0, 0), (0, 0), (halo, (Lp - L) + halo)))

    kernel = functools.partial(_d2n_rowtile_kernel, W=W, L=L, tile=tile, halo=halo)
    step_bytes = C * (4 * blk + 10 * tile) * itemsize
    vmem_limit = int(min(vmem_cap, max(32 * _MIB, step_bytes + 4 * _MIB)))

    out = pl.pallas_call(
        kernel,
        out_shape=jax.ShapeDtypeStruct((B, C, Lp), x.dtype),
        grid_spec=pltpu.PrefetchScalarGridSpec(
            num_scalar_prefetch=0,
            grid=(B, n_tiles),
            in_specs=[pl.BlockSpec((1, C, pl.Element(blk)),
                                   lambda b, t: (b, 0, t * tile))],
            out_specs=pl.BlockSpec((1, C, tile), lambda b, t: (b, 0, t)),
        ),
        compiler_params=pltpu.CompilerParams(
            dimension_semantics=("parallel", "parallel"),
            vmem_limit_bytes=vmem_limit,
        ),
        cost_estimate=cost,
    )(xp)
    return out[:, :, :L].reshape(B, C, H, W)


def depth2normal_ref(x):
    """Pure-JAX reference mirroring the PyTorch forward exactly."""
    xp = jnp.pad(x, ((0, 0), (0, 0), (1, 1), (1, 1)))
    dzdx = xp[:, :, 1:-1, 2:] - xp[:, :, 1:-1, :-2]
    dzdy = xp[:, :, 2:, 1:-1] - xp[:, :, :-2, 1:-1]
    return -jnp.cross(dzdx, dzdy, axis=1)


if __name__ == "__main__":
    key = jax.random.PRNGKey(0)
    k1, k2, k3 = jax.random.split(key, 3)

    # 1) Whole-image, lane-folded path (H*W % 128 == 0).
    x1 = jax.random.normal(k1, (2, 3, 16, 16), dtype=jnp.float32)
    out1 = jax.block_until_ready(depth2normal(x1))
    ref1 = jax.block_until_ready(depth2normal_ref(x1))
    assert out1.shape == ref1.shape and out1.dtype == ref1.dtype
    assert jnp.allclose(out1, ref1, atol=1e-5, rtol=1e-5), "folded path mismatch"

    # 2) Whole-image, sublane fallback path (H*W % 128 != 0, non-pow2 W).
    x2 = jax.random.normal(k2, (2, 3, 10, 12), dtype=jnp.float32)
    out2 = jax.block_until_ready(depth2normal(x2))
    ref2 = jax.block_until_ready(depth2normal_ref(x2))
    assert jnp.allclose(out2, ref2, atol=1e-5, rtol=1e-5), "sublane path mismatch"

    # 3) Row-tiled halo path (forced here; chosen automatically for large images).
    x3 = jax.random.normal(k3, (2, 3, 20, 64), dtype=jnp.float32)
    out3 = jax.block_until_ready(depth2normal(x3, force_row_tile=True,
                                              row_tile_elems=512))
    ref3 = jax.block_until_ready(depth2normal_ref(x3))
    assert jnp.allclose(out3, ref3, atol=1e-5, rtol=1e-5), "row-tiled path mismatch"

    print("KERNEL_OK")
</pallas_src>

<mosaic_0001>
module attributes {stable_mosaic.version = 11 : i64} {
  func.func @_d2n_folded_kernel(%arg0: i32, %arg1: memref<2x768xf32, #tpu.memory_space<vmem>>, %arg2: memref<2x768xf32, #tpu.memory_space<vmem>>) attributes {dimension_semantics = [#tpu.dimension_semantics<parallel>], iteration_bounds = array<i64: 1>, scalar_prefetch = 0 : i64, scratch_operands = 0 : i64, tpu.core_type = #tpu.core_type<tc>, window_params = [{transform_indices = @transform_0, window_bounds = array<i64: 2, 768>}, {transform_indices = @transform_1, window_bounds = array<i64: 2, 768>}]} {
    %c0 = arith.constant 0 : index
    %c0_0 = arith.constant 0 : index
    %0 = vector.load %arg1[%c0, %c0_0] : memref<2x768xf32, #tpu.memory_space<vmem>>, vector<2x768xf32>
    %1 = tpu.iota {dimensions = array<i32: 1>} : vector<1x256xi32>
    %c15_i32 = arith.constant 15 : i32
    %2 = vector.broadcast %c15_i32 : i32 to vector<1x256xi32>
    %3 = arith.andi %1, %2 : vector<1x256xi32>
    %c15_i32_1 = arith.constant 15 : i32
    %4 = vector.broadcast %c15_i32_1 : i32 to vector<1x256xi32>
    %5 = arith.cmpi slt, %3, %4 : vector<1x256xi32>
    %c0_i32 = arith.constant 0 : i32
    %6 = vector.broadcast %c0_i32 : i32 to vector<1x256xi32>
    %7 = arith.cmpi sgt, %3, %6 : vector<1x256xi32>
    %c240_i32 = arith.constant 240 : i32
    %8 = vector.broadcast %c240_i32 : i32 to vector<1x256xi32>
    %9 = arith.cmpi slt, %1, %8 : vector<1x256xi32>
    %c16_i32 = arith.constant 16 : i32
    %10 = vector.broadcast %c16_i32 : i32 to vector<1x256xi32>
    %11 = arith.cmpi sge, %1, %10 : vector<1x256xi32>
    %12 = vector.extract_strided_slice %0 {offsets = [0, 0], sizes = [2, 256], strides = [1, 1]} : vector<2x768xf32> to vector<2x256xf32>
    %13 = vector.extract_strided_slice %0 {offsets = [0, 256], sizes = [2, 256], strides = [1, 1]} : vector<2x768xf32> to vector<2x256xf32>
    %14 = vector.extract_strided_slice %0 {offsets = [0, 512], sizes = [2, 256], strides = [1, 1]} : vector<2x768xf32> to vector<2x256xf32>
    %c255_i32 = arith.constant 255 : i32
    %15 = tpu.dynamic_rotate %12 by %c255_i32 dim 1 : vector<2x256xf32>, i32 -> vector<2x256xf32>
    %c1_i32 = arith.constant 1 : i32
    %16 = tpu.dynamic_rotate %12 by %c1_i32 dim 1 : vector<2x256xf32>, i32 -> vector<2x256xf32>
    %cst = arith.constant 0.000000e+00 : f32
    %17 = vector.shape_cast %5 : vector<1x256xi1> to vector<1x256xi1>
    %18 = vector.broadcast %17 : vector<1x256xi1> to vector<2x256xi1>
    %19 = vector.broadcast %cst : f32 to vector<2x256xf32>
    %20 = arith.select %18, %15, %19 : vector<2x256xi1>, vector<2x256xf32>
    %cst_2 = arith.constant 0.000000e+00 : f32
    %21 = vector.shape_cast %7 : vector<1x256xi1> to vector<1x256xi1>
    %22 = vector.broadcast %21 : vector<1x256xi1> to vector<2x256xi1>
    %23 = vector.broadcast %cst_2 : f32 to vector<2x256xf32>
    %24 = arith.select %22, %16, %23 : vector<2x256xi1>, vector<2x256xf32>
    %25 = arith.subf %20, %24 : vector<2x256xf32>
    %c240_i32_3 = arith.constant 240 : i32
    %26 = tpu.dynamic_rotate %12 by %c240_i32_3 dim 1 : vector<2x256xf32>, i32 -> vector<2x256xf32>
    %c16_i32_4 = arith.constant 16 : i32
    %27 = tpu.dynamic_rotate %12 by %c16_i32_4 dim 1 : vector<2x256xf32>, i32 -> vector<2x256xf32>
    %cst_5 = arith.constant 0.000000e+00 : f32
    %28 = vector.shape_cast %9 : vector<1x256xi1> to vector<1x256xi1>
    %29 = vector.broadcast %28 : vector<1x256xi1> to vector<2x256xi1>
    %30 = vector.broadcast %cst_5 : f32 to vector<2x256xf32>
    %31 = arith.select %29, %26, %30 : vector<2x256xi1>, vector<2x256xf32>
    %cst_6 = arith.constant 0.000000e+00 : f32
    %32 = vector.shape_cast %11 : vector<1x256xi1> to vector<1x256xi1>
    %33 = vector.broadcast %32 : vector<1x256xi1> to vector<2x256xi1>
    %34 = vector.broadcast %cst_6 : f32 to vector<2x256xf32>
    %35 = arith.select %33, %27, %34 : vector<2x256xi1>, vector<2x256xf32>
    %36 = arith.subf %31, %35 : vector<2x256xf32>
    %c255_i32_7 = arith.constant 255 : i32
    %37 = tpu.dynamic_rotate %13 by %c255_i32_7 dim 1 : vector<2x256xf32>, i32 -> vector<2x256xf32>
    %c1_i32_8 = arith.constant 1 : i32
    %38 = tpu.dynamic_rotate %13 by %c1_i32_8 dim 1 : vector<2x256xf32>, i32 -> vector<2x256xf32>
    %cst_9 = arith.constant 0.000000e+00 : f32
    %39 = vector.shape_cast %5 : vector<1x256xi1> to vector<1x256xi1>
    %40 = vector.broadcast %39 : vector<1x256xi1> to vector<2x256xi1>
    %41 = vector.broadcast %cst_9 : f32 to vector<2x256xf32>
    %42 = arith.select %40, %37, %41 : vector<2x256xi1>, vector<2x256xf32>
    %cst_10 = arith.constant 0.000000e+00 : f32
    %43 = vector.shape_cast %7 : vector<1x256xi1> to vector<1x256xi1>
    %44 = vector.broadcast %43 : vector<1x256xi1> to vector<2x256xi1>
    %45 = vector.broadcast %cst_10 : f32 to vector<2x256xf32>
    %46 = arith.select %44, %38, %45 : vector<2x256xi1>, vector<2x256xf32>
    %47 = arith.subf %42, %46 : vector<2x256xf32>
    %c240_i32_11 = arith.constant 240 : i32
    %48 = tpu.dynamic_rotate %13 by %c240_i32_11 dim 1 : vector<2x256xf32>, i32 -> vector<2x256xf32>
    %c16_i32_12 = arith.constant 16 : i32
    %49 = tpu.dynamic_rotate %13 by %c16_i32_12 dim 1 : vector<2x256xf32>, i32 -> vector<2x256xf32>
    %cst_13 = arith.constant 0.000000e+00 : f32
    %50 = vector.shape_cast %9 : vector<1x256xi1> to vector<1x256xi1>
    %51 = vector.broadcast %50 : vector<1x256xi1> to vector<2x256xi1>
    %52 = vector.broadcast %cst_13 : f32 to vector<2x256xf32>
    %53 = arith.select %51, %48, %52 : vector<2x256xi1>, vector<2x256xf32>
    %cst_14 = arith.constant 0.000000e+00 : f32
    %54 = vector.shape_cast %11 : vector<1x256xi1> to vector<1x256xi1>
    %55 = vector.broadcast %54 : vector<1x256xi1> to vector<2x256xi1>
    %56 = vector.broadcast %cst_14 : f32 to vector<2x256xf32>
    %57 = arith.select %55, %49, %56 : vector<2x256xi1>, vector<2x256xf32>
    %58 = arith.subf %53, %57 : vector<2x256xf32>
    %c255_i32_15 = arith.constant 255 : i32
    %59 = tpu.dynamic_rotate %14 by %c255_i32_15 dim 1 : vector<2x256xf32>, i32 -> vector<2x256xf32>
    %c1_i32_16 = arith.constant 1 : i32
    %60 = tpu.dynamic_rotate %14 by %c1_i32_16 dim 1 : vector<2x256xf32>, i32 -> vector<2x256xf32>
    %cst_17 = arith.constant 0.000000e+00 : f32
    %61 = vector.shape_cast %5 : vector<1x256xi1> to vector<1x256xi1>
    %62 = vector.broadcast %61 : vector<1x256xi1> to vector<2x256xi1>
    %63 = vector.broadcast %cst_17 : f32 to vector<2x256xf32>
    %64 = arith.select %62, %59, %63 : vector<2x256xi1>, vector<2x256xf32>
    %cst_18 = arith.constant 0.000000e+00 : f32
    %65 = vector.shape_cast %7 : vector<1x256xi1> to vector<1x256xi1>
    %66 = vector.broadcast %65 : vector<1x256xi1> to vector<2x256xi1>
    %67 = vector.broadcast %cst_18 : f32 to vector<2x256xf32>
    %68 = arith.select %66, %60, %67 : vector<2x256xi1>, vector<2x256xf32>
    %69 = arith.subf %64, %68 : vector<2x256xf32>
    %c240_i32_19 = arith.constant 240 : i32
    %70 = tpu.dynamic_rotate %14 by %c240_i32_19 dim 1 : vector<2x256xf32>, i32 -> vector<2x256xf32>
    %c16_i32_20 = arith.constant 16 : i32
    %71 = tpu.dynamic_rotate %14 by %c16_i32_20 dim 1 : vector<2x256xf32>, i32 -> vector<2x256xf32>
    %cst_21 = arith.constant 0.000000e+00 : f32
    %72 = vector.shape_cast %9 : vector<1x256xi1> to vector<1x256xi1>
    %73 = vector.broadcast %72 : vector<1x256xi1> to vector<2x256xi1>
    %74 = vector.broadcast %cst_21 : f32 to vector<2x256xf32>
    %75 = arith.select %73, %70, %74 : vector<2x256xi1>, vector<2x256xf32>
    %cst_22 = arith.constant 0.000000e+00 : f32
    %76 = vector.shape_cast %11 : vector<1x256xi1> to vector<1x256xi1>
    %77 = vector.broadcast %76 : vector<1x256xi1> to vector<2x256xi1>
    %78 = vector.broadcast %cst_22 : f32 to vector<2x256xf32>
    %79 = arith.select %77, %71, %78 : vector<2x256xi1>, vector<2x256xf32>
    %80 = arith.subf %75, %79 : vector<2x256xf32>
    %81 = arith.mulf %58, %69 : vector<2x256xf32>
    %82 = arith.mulf %80, %47 : vector<2x256xf32>
    %83 = arith.subf %81, %82 : vector<2x256xf32>
    %c0_23 = arith.constant 0 : index
    %c0_24 = arith.constant 0 : index
    %84 = vector.load %arg2[%c0_23, %c0_24] : memref<2x768xf32, #tpu.memory_space<vmem>>, vector<2x256xf32>
    tpu.vector_store %arg2[%c0_23, %c0_24], %83 {strides = array<i32>} : memref<2x768xf32, #tpu.memory_space<vmem>>, vector<2x256xf32>,
    %85 = arith.mulf %80, %25 : vector<2x256xf32>
    %86 = arith.mulf %36, %69 : vector<2x256xf32>
    %87 = arith.subf %85, %86 : vector<2x256xf32>
    %c0_25 = arith.constant 0 : index
    %c256 = arith.constant 256 : index
    %88 = vector.load %arg2[%c0_25, %c256] : memref<2x768xf32, #tpu.memory_space<vmem>>, vector<2x256xf32>
    tpu.vector_store %arg2[%c0_25, %c256], %87 {strides = array<i32>} : memref<2x768xf32, #tpu.memory_space<vmem>>, vector<2x256xf32>,
    %89 = arith.mulf %36, %47 : vector<2x256xf32>
    %90 = arith.mulf %58, %25 : vector<2x256xf32>
    %91 = arith.subf %89, %90 : vector<2x256xf32>
    %c0_26 = arith.constant 0 : index
    %c512 = arith.constant 512 : index
    %92 = vector.load %arg2[%c0_26, %c512] : memref<2x768xf32, #tpu.memory_space<vmem>>, vector<2x256xf32>
    tpu.vector_store %arg2[%c0_26, %c512], %91 {strides = array<i32>} : memref<2x768xf32, #tpu.memory_space<vmem>>, vector<2x256xf32>,
    return
  }
  func.func @transform_0(%arg0: i32) -> (i32, i32) {
    %c0_i32 = arith.constant 0 : i32
    %c0_i32_0 = arith.constant 0 : i32
    return %arg0, %c0_i32 : i32, i32
  }
  func.func @transform_1(%arg0: i32) -> (i32, i32) {
    %c0_i32 = arith.constant 0 : i32
    %c0_i32_0 = arith.constant 0 : i32
    return %arg0, %c0_i32 : i32, i32
  }
}

</mosaic_0001>

<bundles_post_ra>
// kernel: tpu_custom_call.1
= control target key start
LH: loop header
LB: loop body
LE: loop exit
PB: predicated region body
PF: predicated region fallthrough
CT: control target
= control target key end

     0   :  { %6 = vsyncpa [#allocation3], 0  ;;  %s480_s0 = inlined_call_operand.hbm [shape: f32[2,768], index: 0, kind: input, shape index: {}]   ;;  %s481_s1 = inlined_call_operand.hbm [shape: f32[2,768], index: 1, kind: output, shape index: {}]  }
   0x1   :  { %7 = vsyncpa [#allocation4], 0  ;;  %s326_s6 = smov [#allocation2]   ;;  %s278_s10 = scalar_lea.hbm %s480_s0, 192 }
   0x2   :  { %s14_s7 = sshll.u32 %s326_s6, 4  ;;  %p279_p0 = scmp.ne.s32.totalorder %s480_s0, %s278_s10  ;;  %s15_s7 = int_to_ptr.vmem [resolvable:$true] %s14_s7 }
   0x3   :  { %p282_p1 = scmp.lt.u32.totalorder %s278_s10, %s480_s0 }
   0x5   :  { %p284_p2 = pnand %p282_p1, %p279_p0 }
   0x7   :  { %287 = shalt.err (!%p284_p2)
}
   0x8   :  { %s288_s15 = scalar_lea.vmem %s15_s7, 192  ;;  %p293_p4 = scmp.lt.s32.totalorder %s15_s7, %s15_s7 }
   0x9   :  { %p289_p3 = scmp.ne.s32.totalorder %s15_s7, %s288_s15  ;;  %p294_p5 = scmp.lt.s32.totalorder %s288_s15, %s288_s15 }
   0xb   :  { %p295_p6 = por %p294_p5, %p293_p4 }
   0xd   :  { %p296_p7 = pnand %p295_p6, %p289_p3 }
   0xf   :  { %299 = shalt.err (!%p296_p7)
}
  0x10   :  { %17 = dma.hbm_to_vmem [thread:$0]  %s480_s0, 192, %s15_s7, [#allocation3]  }
  0x11   :  { %322 = dma.done.wait [#allocation3], 192  }
  0x12   :  { %323 = vsyncadd [#allocation3], 4294967104  ;;  %v23_v0 = vlaneseq  ;;  %v327_v1 = vmov 1983009808   ;;  %v21_v6 = vld [vmem:[#allocation2] sm:$0xff]  ;;  %s328_s18 = smov 1  }
  0x13   :  { %v38_v2 = vunpack.c.l.s4 %v327_v1  ;;  %s329_s19 = smov 127   ;;  %v103_v9 = vcombine.high %v21_v6, %v21_v6  ;;  %s330_s20 = smov 112   ;;  %v266_v12 = vld.sshfl [vmem:[#allocation2 + $0x8] sm:$0x33 pattern:$0x76325410] }
  0x14   :  { %v41_v3 = vshrl.u32 %v23_v0, 7  ;;  %s331_s0 = smov 16   ;;  %v158_v13 = vcombine.high %v266_v12, %v266_v12  ;;  %v355_v20 = vand.u32 127, %v23_v0  ;;  %s332_s21 = smov [#allocation5]  }
  0x15   :  { %v39_v4 = vunpack.c.0.s8 %v38_v2  ;;  %s257_s22 = sshll.u32 %s332_s21, 4  ;;  %s258_s22 = int_to_ptr.vmem [resolvable:$true] %s257_s22 }
  0x16   :  { %v358_v23 = vadd.s32 128, %v355_v20  ;;  %v26_v24 = vand.u32 15, %v355_v20  ;;  %vm58_vm0 = vcmp.lt.s32.totalorder %v355_v20, 1  ;;  %vm79_vm3 = vcmp.lt.s32.totalorder %v355_v20, 112  ;;  %s300_s23 = scalar_lea.vmem %s258_s22, 192  ;;  %p305_p9 = scmp.lt.s32.totalorder %s258_s22, %s258_s22 }
  0x17   :  { %v42_v5 = vsub.s32 %v39_v4, %v41_v3  ;;  %vm86_vm4 = vcmp.lt.s32.totalorder %v355_v20, 16  ;;  %vm51_vm5 = vcmp.lt.s32.totalorder %v355_v20, 127  ;;  %vm34_vm7 = vcmp.ge.s32.totalorder %v355_v20, 16  ;;  %p301_p8 = scmp.ne.s32.totalorder %s258_s22, %s300_s23  ;;  %p306_p10 = scmp.lt.s32.totalorder %s300_s23, %s300_s23 }
  0x18   :  { %v27_v27 = vand.u32 15, %v358_v23  ;;  %vm363_vm1 = vcmp.gt.s32.totalorder %v26_v24, 0  ;;  %vm33_vm2 = vcmp.lt.s32.totalorder %v358_v23, 240  ;;  %vm378_vm8 = vcmp.lt.s32.totalorder %v26_v24, 15 }
  0x19   :  { %v43_v7 = vrot.slane %v21_v6, %v42_v5  ;;  %v110_v10 = vrot.slane %v103_v9, %v42_v5  ;;  %p307_p11 = por %p306_p10, %p305_p9 }
  0x1a   :  { %vm373_vm6 = vcmp.gt.s32.totalorder %v27_v27, 0  ;;  %vm388_vm9 = vcmp.lt.s32.totalorder %v27_v27, 15 }
  0x1b   :  { %54 = vrot.lane.b32.xlu1 %v43_v7, %s328_s18  ;;  %47 = vrot.lane.b32.xlu0 %v43_v7, %s329_s19  ;;  %v44_v8 = vcombine.high %v43_v7, %v43_v7  ;;  %v111_v11 = vcombine.high %v110_v10, %v110_v10  ;;  %p308_p12 = pnand %p307_p11, %p301_p8 }
  0x1f   :  { %75 = vrot.lane.b32.xlu0 %v43_v7, %s330_s20  ;;  %56 = vrot.lane.b32.xlu1 %v44_v8, %s328_s18 }
  0x23   :  { %82 = vrot.lane.b32.xlu0 %v43_v7, %s331_s0  ;;  %77 = vrot.lane.b32.xlu1 %v44_v8, %s330_s20 }
  0x27   :  { %84 = vrot.lane.b32.xlu1 %v44_v8, %s331_s0  ;;  %49 = vrot.lane.b32.xlu0 %v44_v8, %s329_s19 }
  0x2b   :  { %116 = vrot.lane.b32.xlu1 %v111_v11, %s329_s19  ;;  %114 = vrot.lane.b32.xlu0 %v110_v10, %s329_s19 }
  0x2f   :  { %122 = vrot.lane.b32.xlu1 %v111_v11, %s328_s18  ;;  %120 = vrot.lane.b32.xlu0 %v110_v10, %s328_s18 }
  0x33   :  { %134 = vrot.lane.b32.xlu1 %v111_v11, %s330_s20  ;;  %132 = vrot.lane.b32.xlu0 %v110_v10, %s330_s20 }
  0x37   :  { %140 = vrot.lane.b32.xlu1 %v111_v11, %s331_s0  ;;  %138 = vrot.lane.b32.xlu0 %v110_v10, %s331_s0 }
  0x3b   :  { %163 = vrot.lane.b32.xlu1 %v158_v13, %s329_s19  ;;  %161 = vrot.lane.b32.xlu0 %v266_v12, %s329_s19 }
  0x3f   :  { %169 = vrot.lane.b32.xlu1 %v158_v13, %s328_s18  ;;  %167 = vrot.lane.b32.xlu0 %v266_v12, %s328_s18 }
  0x43   :  { %181 = vrot.lane.b32.xlu1 %v158_v13, %s330_s20  ;;  %179 = vrot.lane.b32.xlu0 %v266_v12, %s330_s20 }
  0x47   :  { %187 = vrot.lane.b32.xlu1 %v158_v13, %s331_s0  ;;  %185 = vrot.lane.b32.xlu0 %v266_v12, %s331_s0 }
  0x8d   :  { %v55_v14 = vpop.permute.xlu1 %54  ;;  %v48_v15 = vpop.permute.xlu0 %47 }
  0x91   :  { %v76_v16 = vpop.permute.xlu0 %75  ;;  %v57_v17 = vpop.permute.xlu1 %56 }
  0x92   :  { %v60_v29 = vsel %vm58_vm0, %v57_v17, %v55_v14  ;;  %v59_v35 = vsel %vm58_vm0, %v55_v14, %v57_v17 }
  0x93   :  { %v71_v36 = vsel %vm363_vm1, %v60_v29, 0.0  ;;  %v72_v49 = vsel %vm373_vm6, %v59_v35, 0.0 }
  0x95   :  { %v83_v18 = vpop.permute.xlu0 %82  ;;  %v78_v19 = vpop.permute.xlu1 %77 }
  0x96   :  { %v81_v39 = vsel %vm79_vm3, %v78_v19, %v76_v16  ;;  %v80_v50 = vsel %vm79_vm3, %v76_v16, %v78_v19 }
  0x97   :  { %v94_v53 = vsel %vm33_vm2, %v81_v39, 0.0 }
  0x99   :  { %v85_v21 = vpop.permute.xlu1 %84  ;;  %v50_v22 = vpop.permute.xlu0 %49 }
  0x9a   :  { %v88_v40 = vsel %vm86_vm4, %v85_v21, %v83_v18  ;;  %v53_v41 = vsel %vm51_vm5, %v50_v22, %v48_v15  ;;  %v87_v45 = vsel %vm86_vm4, %v83_v18, %v85_v21  ;;  %v52_v46 = vsel %vm51_vm5, %v48_v15, %v50_v22 }
  0x9b   :  { %v99_v54 = vsel %vm34_vm7, %v88_v40, 0.0  ;;  %v66_v55 = vsel %vm388_vm9, %v53_v41, 0.0  ;;  %v102_v57 = vsub.f32 %v94_v53, %v87_v45  ;;  %v65_v58 = vsel %vm378_vm8, %v52_v46, 0.0 }
  0x9c   :  { %v74_v3 = vsub.f32 %v66_v55, %v72_v49  ;;  %v101_v7 = vsub.f32 %v80_v50, %v99_v54  ;;  %v73_v8 = vsub.f32 %v65_v58, %v71_v36 }
  0x9d   :  { %v117_v25 = vpop.permute.xlu1 %116  ;;  %v115_v26 = vpop.permute.xlu0 %114 }
  0x9e   :  { %v119_v42 = vsel %vm51_vm5, %v117_v25, %v115_v26  ;;  %v118_v47 = vsel %vm51_vm5, %v115_v26, %v117_v25 }
  0x9f   :  { %v127_v56 = vsel %vm388_vm9, %v119_v42, 0.0  ;;  %v126_v59 = vsel %vm378_vm8, %v118_v47, 0.0 }
  0xa1   :  { %v123_v30 = vpop.permute.xlu1 %122  ;;  %v121_v31 = vpop.permute.xlu0 %120 }
  0xa2   :  { %v124_v34 = vsel %vm58_vm0, %v121_v31, %v123_v30  ;;  %v125_v38 = vsel %vm58_vm0, %v123_v30, %v121_v31 }
  0xa3   :  { %v129_v48 = vsel %vm373_vm6, %v124_v34, 0.0  ;;  %v128_v51 = vsel %vm363_vm1, %v125_v38, 0.0 }
  0xa4   :  { %v131_v60 = vsub.f32 %v127_v56, %v129_v48  ;;  %v130_v63 = vsub.f32 %v126_v59, %v128_v51 }
  0xa5   :  { %v135_v43 = vpop.permute.xlu1 %134  ;;  %v133_v44 = vpop.permute.xlu0 %132 }
  0xa6   :  { %v137_v52 = vsel %vm79_vm3, %v135_v43, %v133_v44  ;;  %v136_v4 = vsel %vm79_vm3, %v133_v44, %v135_v43  ;;  %v234_v10 = vmul.f32 %v131_v60, %v102_v57  ;;  %v233_v14 = vmul.f32 %v130_v63, %v101_v7 }
  0xa7   :  { %v145_v0 = vsel %vm33_vm2, %v137_v52, 0.0 }
  0xa9   :  { %v141_v61 = vpop.permute.xlu1 %140  ;;  %v139_v62 = vpop.permute.xlu0 %138 }
  0xaa   :  { %v142_v1 = vsel %vm86_vm4, %v139_v62, %v141_v61  ;;  %v143_v2 = vsel %vm86_vm4, %v141_v61, %v139_v62 }
  0xab   :  { %v146_v5 = vsel %vm34_vm7, %v143_v2, 0.0  ;;  %v149_v6 = vsub.f32 %v145_v0, %v142_v1 }
  0xac   :  { %v148_v9 = vsub.f32 %v136_v4, %v146_v5 }
  0xad   :  { %v236_v11 = vmul.f32 %v149_v6, %v74_v3  ;;  %v164_v12 = vpop.permute.xlu1 %163  ;;  %v162_v13 = vpop.permute.xlu0 %161 }
  0xae   :  { %v235_v15 = vmul.f32 %v148_v9, %v73_v8  ;;  %v166_v25 = vsel %vm51_vm5, %v164_v12, %v162_v13  ;;  %v165_v29 = vsel %vm51_vm5, %v162_v13, %v164_v12 }
  0xaf   :  { %v238_v16 = vsub.f32 %v234_v10, %v236_v11  ;;  %v174_v35 = vsel %vm388_vm9, %v166_v25, 0.0  ;;  %v173_v36 = vsel %vm378_vm8, %v165_v29, 0.0 }
  0xb0   :  { %v237_v17 = vsub.f32 %v233_v14, %v235_v15 }
  0xb1   :  { %v170_v18 = vpop.permute.xlu1 %169  ;;  %v168_v19 = vpop.permute.xlu0 %167 }
  0xb2   :  { %v241_v21 = vcombine.low %v237_v17, %v238_v16  ;;  %v171_v22 = vsel %vm58_vm0, %v168_v19, %v170_v18  ;;  %v172_v24 = vsel %vm58_vm0, %v170_v18, %v168_v19 }
  0xb3   :  { %v176_v30 = vsel %vm373_vm6, %v171_v22, 0.0  ;;  %v175_v31 = vsel %vm363_vm1, %v172_v24, 0.0 }
  0xb4   :  { %269 = vst.sshfl [vmem:[#allocation5 + $0x8] sm:$0x33 pattern:$0x76325410] %v241_v21  ;;  %v178_v38 = vsub.f32 %v174_v35, %v176_v30  ;;  %v177_v41 = vsub.f32 %v173_v36, %v175_v31 }
  0xb5   :  { %v182_v26 = vpop.permute.xlu1 %181  ;;  %v180_v27 = vpop.permute.xlu0 %179 }
  0xb6   :  { %v184_v34 = vsel %vm79_vm3, %v182_v26, %v180_v27  ;;  %v183_v37 = vsel %vm79_vm3, %v180_v27, %v182_v26  ;;  %v198_v45 = vmul.f32 %v178_v38, %v149_v6  ;;  %v218_v46 = vmul.f32 %v178_v38, %v102_v57 }
  0xb7   :  { %v192_v32 = vsel %vm33_vm2, %v184_v34, 0.0  ;;  %v197_v23 = vmul.f32 %v177_v41, %v148_v9  ;;  %v217_v49 = vmul.f32 %v177_v41, %v101_v7 }
  0xb9   :  { %v188_v39 = vpop.permute.xlu1 %187  ;;  %v186_v40 = vpop.permute.xlu0 %185 }
  0xba   :  { %v189_v28 = vsel %vm86_vm4, %v186_v40, %v188_v39  ;;  %v190_v42 = vsel %vm86_vm4, %v188_v39, %v186_v40 }
  0xbb   :  { %v193_v33 = vsel %vm34_vm7, %v190_v42, 0.0  ;;  %v196_v43 = vsub.f32 %v192_v32, %v189_v28 }
  0xbc   :  { %v195_v44 = vsub.f32 %v183_v37, %v193_v33 }
  0xbd   :  { %v200_v47 = vmul.f32 %v196_v43, %v131_v60  ;;  %v216_v48 = vmul.f32 %v196_v43, %v74_v3 }
  0xbe   :  { %v199_v50 = vmul.f32 %v195_v44, %v130_v63  ;;  %v215_v51 = vmul.f32 %v195_v44, %v73_v8 }
  0xbf   :  { %v202_v52 = vsub.f32 %v198_v45, %v200_v47  ;;  %v220_v53 = vsub.f32 %v216_v48, %v218_v46 }
  0xc0   :  { %v201_v54 = vsub.f32 %v197_v23, %v199_v50  ;;  %v219_v55 = vsub.f32 %v215_v51, %v217_v49 }
  0xc2   :  { %v205_v56 = vcombine.low %v201_v54, %v202_v52  ;;  %v223_v58 = vcombine.low %v219_v55, %v220_v53 }
  0xc4   :  { %267 = vst.sshfl [vmem:[#allocation5] sm:$0x33 pattern:$0x76325410] %v205_v56 }
  0xc5   :  { %268 = vst.sshfl [vmem:[#allocation5 + $0x4] sm:$0x33 pattern:$0x76325410] %v223_v58 }
  0xc6   :  { %311 = shalt.err (!%p308_p12)
}
  0xc7   :  { %s312_s26 = scalar_lea.hbm %s481_s1, 192 }
  0xc8   :  { %p313_p13 = scmp.ne.s32.totalorder %s481_s1, %s312_s26  ;;  %p316_p0 = scmp.lt.u32.totalorder %s312_s26, %s481_s1 }
  0xca   :  { %p318_p1 = pnand %p316_p0, %p313_p13 }
  0xcc   :  { %321 = shalt.err (!%p318_p1)
}
  0xcd   :  { %260 = dma.vmem_to_hbm [thread:$0]  %s258_s22, 192, %s481_s1, [#allocation4]  }
  0xce   :  { %324 = dma.done.wait [#allocation4], 192  }
  0xcf   :  { %325 = vsyncadd [#allocation4], 4294967104 }
  0xd0   :  { %264 = vsyncpa [#allocation3], 1 }
  0xd1   :  { %265 = vsyncpa [#allocation4], 1 }

</bundles_post_ra>
